<compile_context>
chip_gen: v6e
topology: v6e:2x2x1
jax: 0.10.0
libtpu: 0.0.40
codegen_flags: <defaults>
</compile_context>

<pallas_src>
import functools

import jax
import jax.numpy as jnp
from jax.experimental import pallas as pl
from jax.experimental.pallas import tpu as pltpu


def _round_up(a: int, m: int) -> int:
    return (a + m - 1) // m * m


# ----------------------------------------------------------------------------
# Kernel helpers
# ----------------------------------------------------------------------------
def _softmax_dim0(logits, n_valid_rows):
    """Numerically-stable softmax over dim 0; rows >= n_valid_rows are masked."""
    if n_valid_rows < logits.shape[0]:
        row_ids = jax.lax.broadcasted_iota(jnp.int32, logits.shape, 0)
        logits = jnp.where(row_ids < n_valid_rows, logits, -jnp.inf)
    m = jnp.max(logits, axis=0, keepdims=True)
    e = jnp.exp(logits - m)
    denom = jnp.sum(e, axis=0, keepdims=True)
    # Exact divide (NOT pl.reciprocal(approx=True)): per-column sums must equal
    # 1 to f32 precision, and the epilogue is not EUP-bound anyway.
    return e / denom


def _dot_bt(x_blk, w_blk):
    # (Bp, tk) . (tc, tk) -> (Bp, tc): contract the H axes of both operands
    # (torch-layout weight, no transpose needed), f32 MXU accumulation.
    return jax.lax.dot_general(
        x_blk, w_blk,
        dimension_numbers=(((1,), (1,)), ((), ())),
        preferred_element_type=jnp.float32,
    )


# ----------------------------------------------------------------------------
# Kernels
# ----------------------------------------------------------------------------
def _single_step_kernel(x_ref, w_ref, b_ref, o_ref, *, n_valid_rows):
    """Fast path: whole H fits in one K step -> no reduction machinery."""
    logits = b_ref[...] + _dot_bt(x_ref[...], w_ref[...])
    o_ref[...] = _softmax_dim0(logits, n_valid_rows).astype(o_ref.dtype)


def _reduction_kernel(x_ref, w_ref, b_ref, o_ref, *, tk, n_valid_rows,
                      x_resident):
    """grid = (C tiles [parallel], K tiles [arbitrary reduction])."""
    k = pl.program_id(1)

    @pl.when(k == 0)
    def _init():
        # Bias add folded into the accumulator init.  o_ref is f32 and stays
        # resident across the K reduction (its index map ignores k).
        o_ref[...] = jnp.broadcast_to(b_ref[...], o_ref.shape)

    if x_resident:
        start = pl.multiple_of(k * tk, tk)
        x_blk = x_ref[:, pl.ds(start, tk)]     # x fetched once, sliced per k
    else:
        x_blk = x_ref[...]                     # streamed (Bp, tk) block
    o_ref[...] += _dot_bt(x_blk, w_ref[...])

    @pl.when(k == pl.num_programs(1) - 1)
    def _finalize():
        o_ref[...] = _softmax_dim0(o_ref[...], n_valid_rows).astype(o_ref.dtype)


# ----------------------------------------------------------------------------
# Tiling plan + one-time parameter preparation
# ----------------------------------------------------------------------------
def plan_tiles(B, H, C, *, tc=512, tk=2048, vmem_budget_bytes=12 << 20):
    Bp = _round_up(max(B, 1), 16)          # bf16 vreg is (16, 128): pack sublanes
    Cp0 = _round_up(C, 128)                # lane-dense output stores
    tc = min(tc, Cp0)
    if Cp0 >= 2 * 128:
        # v7x megacore: give the "parallel" C axis at least two tiles.
        tc = min(tc, max(128, (Cp0 // 2) // 128 * 128))
    Cp = _round_up(Cp0, tc)

    if H <= tk:
        tk_eff, Hp, n_k = H, H, 1
    else:
        n_k = pl.cdiv(H, tk)
        tk_eff = _round_up(pl.cdiv(H, n_k), 128)   # minimize H padding
        Hp = n_k * tk_eff

    # Keep x fully VMEM-resident (fetched once) when it comfortably fits.
    x_resident = (Bp * Hp * 2) <= (4 << 20) or n_k == 1

    def vmem_estimate(tc_, tk_):
        x_b = 2 * Bp * (Hp if x_resident else tk_) * 2   # bf16 (x2 buffering)
        w_b = 2 * tc_ * tk_ * 2                          # bf16, double-buffered
        o_b = 2 * Bp * tc_ * 4                           # f32 resident out block
        b_b = 2 * tc_ * 4
        return x_b + w_b + o_b + b_b

    # Clamp tiles so we fit every generation's default scoped-VMEM limit
    # (v5e: 16 MiB) and v7x's 64 MiB physical VMEM without extra flags.
    while (vmem_estimate(tc, tk_eff) > vmem_budget_bytes
           and n_k > 1 and tk_eff > 512):
        tk_eff = max(512, _round_up(tk_eff // 2, 128))
        n_k = pl.cdiv(H, tk_eff)
        Hp = n_k * tk_eff
    while vmem_estimate(tc, tk_eff) > vmem_budget_bytes and tc > 128:
        tc = max(128, (tc // 2) // 128 * 128)
        Cp = _round_up(Cp0, tc)

    return dict(B=B, H=H, C=C, Bp=Bp, Hp=Hp, Cp=Cp,
                tc=tc, tk=tk_eff, n_k=n_k, x_resident=x_resident)


def prepare_classifier_params(w_t, bias, plan):
    """ONE-TIME parameter transform (setup time, never on the forward path):
    torch-layout W (C, H) -> bf16, zero-padded to (Cp, Hp); bias -> f32 (1, Cp).
    Padded columns have zero weight/bias and are sliced off after the call."""
    C, H = w_t.shape
    Cp, Hp = plan["Cp"], plan["Hp"]
    w_p = jnp.pad(w_t.astype(jnp.bfloat16), ((0, Cp - C), (0, Hp - H)))
    b_p = jnp.pad(bias.astype(jnp.float32).reshape(1, C), ((0, 0), (0, Cp - C)))
    return w_p, b_p


# ----------------------------------------------------------------------------
# Forward
# ----------------------------------------------------------------------------
def classifier_with_softmax(x, w_p, b_p, plan):
    B, H, C = plan["B"], plan["H"], plan["C"]
    assert x.shape == (B, H), f"x shape {x.shape} != planned {(B, H)}"
    Bp, Hp, Cp = plan["Bp"], plan["Hp"], plan["Cp"]
    tc, tk, n_k = plan["tc"], plan["tk"], plan["n_k"]
    n_c = Cp // tc

    xb = x.astype(jnp.bfloat16)
    if (Bp, Hp) != (B, H):
        xb = jnp.pad(xb, ((0, Bp - B), (0, Hp - H)))   # zero rows/cols: masked/no-op

    out_shape = jax.ShapeDtypeStruct((Bp, Cp), jnp.float32)

    if n_k == 1:
        # Degenerate single-K-step fast path: 1-D grid, no pl.when machinery.
        kernel = functools.partial(_single_step_kernel, n_valid_rows=B)
        grid_spec = pltpu.PrefetchScalarGridSpec(
            num_scalar_prefetch=0,
            grid=(n_c,),
            in_specs=[
                pl.BlockSpec((Bp, Hp), lambda j: (0, 0)),    # x, resident
                pl.BlockSpec((tc, Hp), lambda j: (j, 0)),    # W, torch layout
                pl.BlockSpec((1, tc), lambda j: (0, j)),     # bias
            ],
            out_specs=pl.BlockSpec((Bp, tc), lambda j: (0, j)),
        )
        dim_sem = ("parallel",)
    else:
        x_resident = plan["x_resident"]
        kernel = functools.partial(_reduction_kernel, tk=tk, n_valid_rows=B,
                                   x_resident=x_resident)
        if x_resident:
            x_spec = pl.BlockSpec((Bp, Hp), lambda j, k: (0, 0))   # fetch once
        else:
            x_spec = pl.BlockSpec((Bp, tk), lambda j, k: (0, k))   # stream per k
        grid_spec = pltpu.PrefetchScalarGridSpec(
            num_scalar_prefetch=0,
            grid=(n_c, n_k),                  # reduction axis last (convention)
            in_specs=[
                x_spec,
                pl.BlockSpec((tc, tk), lambda j, k: (j, k)),  # W, torch layout
                pl.BlockSpec((1, tc), lambda j, k: (0, j)),   # bias
            ],
            out_specs=pl.BlockSpec((Bp, tc), lambda j, k: (0, j)),  # k-resident
        )
        dim_sem = ("parallel", "arbitrary")

    out_p = pl.pallas_call(
        kernel,
        out_shape=out_shape,
        grid_spec=grid_spec,
        compiler_params=pltpu.CompilerParams(dimension_semantics=dim_sem),
    )(xb, w_p, b_p)

    return out_p[:B, :C]


class ClassifierWithSoftmaxTPU:
    """Mirrors the PyTorch module: the weight transform happens once here."""

    def __init__(self, w_t, bias, batch_size):
        C, H = w_t.shape
        self.plan = plan_tiles(batch_size, H, C)
        self.w_p, self.b_p = prepare_classifier_params(w_t, bias, self.plan)

    def __call__(self, x):
        return classifier_with_softmax(x, self.w_p, self.b_p, self.plan)


# ----------------------------------------------------------------------------
# Self-test
# ----------------------------------------------------------------------------
if __name__ == "__main__":
    # Small shapes consistent with a linear classifier head.
    B, H, C = 8, 32, 16

    key = jax.random.PRNGKey(0)
    kx, kw, kb = jax.random.split(key, 3)

    x = jax.random.normal(kx, (B, H), dtype=jnp.float32)
    # Deterministic nn.Linear-style init: uniform(-1/sqrt(H), 1/sqrt(H)).
    bound = 1.0 / (H ** 0.5)
    w_t = jax.random.uniform(kw, (C, H), minval=-bound, maxval=bound,
                             dtype=jnp.float32)               # torch layout (C, H)
    bias = jax.random.uniform(kb, (C,), minval=-bound, maxval=bound,
                              dtype=jnp.float32)

    model = ClassifierWithSoftmaxTPU(w_t, bias, batch_size=B)   # W prepared once
    out = jax.block_until_ready(model(x))

    # Reference in plain JAX, using the same bf16-rounded matmul inputs the
    # kernel sees (accumulation and softmax in f32), softmax over dim=0.
    xr = x.astype(jnp.bfloat16).astype(jnp.float32)
    wr = w_t.astype(jnp.bfloat16).astype(jnp.float32)
    logits_ref = xr @ wr.T + bias.reshape(1, C)
    ref = jax.nn.softmax(logits_ref, axis=0)

    assert out.shape == (B, C)
    assert jnp.allclose(out, ref, atol=2e-3, rtol=2e-3), "mismatch vs reference"
    # Exact-divide epilogue: every column of a dim-0 softmax sums to ~1.
    assert jnp.allclose(jnp.sum(out, axis=0), jnp.ones((C,)), atol=1e-3), \
        "columns not normalized"

    print("KERNEL_OK")
</pallas_src>

<mosaic_0001>
module attributes {stable_mosaic.version = 11 : i64} {
  func.func @_single_step_kernel(%arg0: i32, %arg1: memref<16x32xbf16, #tpu.memory_space<vmem>>, %arg2: memref<128x32xbf16, #tpu.memory_space<vmem>>, %arg3: memref<1x128xf32, #tpu.memory_space<vmem>>, %arg4: memref<16x128xf32, #tpu.memory_space<vmem>>) attributes {dimension_semantics = [#tpu.dimension_semantics<parallel>], iteration_bounds = array<i64: 1>, scalar_prefetch = 0 : i64, scratch_operands = 0 : i64, tpu.core_type = #tpu.core_type<tc>, window_params = [{pipeline_mode = #tpu.pipeline_mode<synchronous>, transform_indices = @transform_0, window_bounds = array<i64: 16, 32>}, {transform_indices = @transform_1, window_bounds = array<i64: 128, 32>}, {transform_indices = @transform_2, window_bounds = array<i64: 1, 128>}, {transform_indices = @transform_3, window_bounds = array<i64: 16, 128>}]} {
    %c0 = arith.constant 0 : index
    %c0_0 = arith.constant 0 : index
    %0 = vector.load %arg3[%c0, %c0_0] : memref<1x128xf32, #tpu.memory_space<vmem>>, vector<1x128xf32>
    %c0_1 = arith.constant 0 : index
    %c0_2 = arith.constant 0 : index
    %1 = vector.load %arg1[%c0_1, %c0_2] : memref<16x32xbf16, #tpu.memory_space<vmem>>, vector<16x32xbf16>
    %c0_3 = arith.constant 0 : index
    %c0_4 = arith.constant 0 : index
    %2 = vector.load %arg2[%c0_3, %c0_4] : memref<128x32xbf16, #tpu.memory_space<vmem>>, vector<128x32xbf16>
    %cst = arith.constant dense<0.000000e+00> : vector<16x128xf32>
    %3 = tpu.matmul %1, %2, %cst {dimension_numbers = #tpu.dot_dimension_numbers<[1], [1], [0], [0], [0, 0, 1, 0], [], []>} : vector<16x32xbf16>, vector<128x32xbf16>, vector<16x128xf32> -> vector<16x128xf32>
    %4 = vector.broadcast %0 : vector<1x128xf32> to vector<16x128xf32>
    %5 = arith.addf %4, %3 : vector<16x128xf32>
    %6 = tpu.iota {dimensions = array<i32: 0>} : vector<16x128xi32>
    %c8_i32 = arith.constant 8 : i32
    %7 = vector.broadcast %c8_i32 : i32 to vector<16x128xi32>
    %8 = arith.cmpi slt, %6, %7 : vector<16x128xi32>
    %cst_5 = arith.constant 0xFF800000 : f32
    %9 = vector.broadcast %cst_5 : f32 to vector<16x128xf32>
    %10 = arith.select %8, %5, %9 : vector<16x128xi1>, vector<16x128xf32>
    %cst_6 = arith.constant dense<0xFF800000> : vector<128xf32>
    %11 = vector.multi_reduction <maximumf>, %10, %cst_6 [0] : vector<16x128xf32> to vector<128xf32>
    %12 = vector.shape_cast %11 : vector<128xf32> to vector<1x128xf32>
    %13 = vector.broadcast %12 : vector<1x128xf32> to vector<16x128xf32>
    %14 = arith.subf %10, %13 : vector<16x128xf32>
    %15 = math.exp %14 : vector<16x128xf32>
    %cst_7 = arith.constant dense<0.000000e+00> : vector<128xf32>
    %16 = vector.multi_reduction <add>, %15, %cst_7 [0] : vector<16x128xf32> to vector<128xf32>
    %17 = vector.shape_cast %16 : vector<128xf32> to vector<1x128xf32>
    %18 = vector.broadcast %17 : vector<1x128xf32> to vector<16x128xf32>
    %19 = arith.divf %15, %18 : vector<16x128xf32>
    %c0_8 = arith.constant 0 : index
    %c0_9 = arith.constant 0 : index
    %20 = vector.load %arg4[%c0_8, %c0_9] : memref<16x128xf32, #tpu.memory_space<vmem>>, vector<16x128xf32>
    tpu.vector_store %arg4[%c0_8, %c0_9], %19 {strides = array<i32>} : memref<16x128xf32, #tpu.memory_space<vmem>>, vector<16x128xf32>,
    return
  }
  func.func @transform_0(%arg0: i32) -> (i32, i32) {
    %c0_i32 = arith.constant 0 : i32
    %c0_i32_0 = arith.constant 0 : i32
    %c0_i32_1 = arith.constant 0 : i32
    return %c0_i32, %c0_i32_0 : i32, i32
  }
  func.func @transform_1(%arg0: i32) -> (i32, i32) {
    %c0_i32 = arith.constant 0 : i32
    %c0_i32_0 = arith.constant 0 : i32
    return %arg0, %c0_i32 : i32, i32
  }
  func.func @transform_2(%arg0: i32) -> (i32, i32) {
    %c0_i32 = arith.constant 0 : i32
    %c0_i32_0 = arith.constant 0 : i32
    return %c0_i32, %arg0 : i32, i32
  }
  func.func @transform_3(%arg0: i32) -> (i32, i32) {
    %c0_i32 = arith.constant 0 : i32
    %c0_i32_0 = arith.constant 0 : i32
    return %c0_i32, %arg0 : i32, i32
  }
}

</mosaic_0001>

<bundles_post_ra>
// kernel: tpu_custom_call.1
= control target key start
LH: loop header
LB: loop body
LE: loop exit
PB: predicated region body
PF: predicated region fallthrough
CT: control target
= control target key end

     0   :  { %v287_v1 = vmov 0.0   ;;  %vm80_vm0 = vcmask 261120   ;;  %vm288_vm1 = vmmov 0   ;;  %s354_s0 = inlined_call_operand.vmem [shape: bf16[16,32], index: 0, kind: input, shape index: {}]   ;;  %s355_s1 = inlined_call_operand.vmem [shape: bf16[128,32], index: 1, kind: input, shape index: {}]   ;;  %s356_s2 = inlined_call_operand.vmem [shape: f32[1,128], index: 2, kind: input, shape index: {}]   ;;  %s357_s3 = inlined_call_operand.hbm [shape: f32[16,128], index: 3, kind: output, shape index: {}]  }
   0x1   :  { %v250_v0 = vld [vmem:[%s355_s1 + $0x38] sm:$0xff]   ;;  %225 = vmatprep.subr.bf16.mxu0 %v287_v1  ;;  %v251_v3 = vld [vmem:[%s355_s1 + $0x30] sm:$0xff]   ;;  %241 = vmatprep.mubr.msk.bf16.mxu0 %vm288_vm1, %v287_v1 }
   0x2   :  { %v106_v2 = vsel %vm80_vm0, %v250_v0, 0  ;;  %v103_v4 = vsel %vm80_vm0, %v251_v3, 0 }
   0x3   :  { %226 = vmatpush3.bf16.xpose.msra.mxu0 %v106_v2 }
   0x4   :  { %227 = vmatprep.subr.bf16.mxu0 %v287_v1 }
   0x5   :  { %8 = vsyncpa [#allocation3], 0  ;;  %v252_v5 = vld [vmem:[%s355_s1 + $0x28] sm:$0xff]   ;;  %v253_v7 = vld [vmem:[%s355_s1 + $0x20] sm:$0xff]  }
   0x6   :  { %v100_v6 = vsel %vm80_vm0, %v252_v5, 0  ;;  %v97_v8 = vsel %vm80_vm0, %v253_v7, 0  ;;  %v254_v9 = vld [vmem:[%s355_s1 + $0x18] sm:$0xff]   ;;  %v255_v11 = vld [vmem:[%s355_s1 + $0x10] sm:$0xff]   ;;  %v256_v13 = vld [vmem:[%s355_s1 + $0x8] sm:$0xff]  }
   0x7   :  { %v94_v10 = vsel %vm80_vm0, %v254_v9, 0  ;;  %v91_v12 = vsel %vm80_vm0, %v255_v11, 0  ;;  %v88_v14 = vsel %vm80_vm0, %v256_v13, 0  ;;  %v257_v15 = vld [vmem:[%s355_s1] sm:$0xff]  }
   0x8   :  { %v85_v16 = vsel %vm80_vm0, %v257_v15, 0  ;;  %v258_v17 = vld [vmem:[%s354_s0] sm:$0xff]   ;;  %s289_s0 = smov [#allocation2]  }
   0x9   :  { %v215_v18 = vld [vmem:[%s356_s2] ss:$0 sm:$0xff]  ;;  %s194_s1 = sshll.u32 %s289_s0, 4  ;;  %s195_s1 = int_to_ptr.vmem [resolvable:$true] %s194_s1 }
   0xa   :  { %s265_s2 = scalar_lea.vmem %s195_s1, 256  ;;  %p270_p1 = scmp.lt.s32.totalorder %s195_s1, %s195_s1 }
   0xb   :  { %228 = vmatpush3.bf16.xpose.msra.mxu0 %v103_v4  ;;  %p266_p0 = scmp.ne.s32.totalorder %s195_s1, %s265_s2  ;;  %p271_p2 = scmp.lt.s32.totalorder %s265_s2, %s265_s2 }
   0xc   :  { %229 = vmatprep.subr.bf16.mxu0 %v287_v1 }
   0xd   :  { %p272_p3 = por %p271_p2, %p270_p1 }
   0xf   :  { %p273_p4 = pnand %p272_p3, %p266_p0 }
  0x13   :  { %230 = vmatpush3.bf16.xpose.msra.mxu0 %v100_v6 }
  0x14   :  { %231 = vmatprep.subr.bf16.mxu0 %v287_v1 }
  0x1b   :  { %232 = vmatpush3.bf16.xpose.msra.mxu0 %v97_v8 }
  0x1c   :  { %233 = vmatprep.subr.bf16.mxu0 %v287_v1 }
  0x23   :  { %234 = vmatpush3.bf16.xpose.msra.mxu0 %v94_v10 }
  0x24   :  { %235 = vmatprep.subr.bf16.mxu0 %v287_v1 }
  0x2b   :  { %236 = vmatpush3.bf16.xpose.msra.mxu0 %v91_v12 }
  0x2c   :  { %237 = vmatprep.subr.bf16.mxu0 %v287_v1 }
  0x33   :  { %238 = vmatpush3.bf16.xpose.msra.mxu0 %v88_v14 }
  0x34   :  { %239 = vmatprep.subr.bf16.mxu0 %v287_v1 }
  0x3b   :  { %240 = vmatpush3.bf16.xpose.msra.mxu0 %v85_v16 }
  0x42   :  { %242 = vmatmul.mubr.msk.bf16.vlgmr.msra.gmra.mxu0 %vm80_vm0, %v258_v17 }
 0x102   :  { %v142_v19 = vpop.f32.mrf.mxu0 }
 0x103   :  { %v155_v20 = vadd.f32 %v215_v18, %v142_v19 }
 0x104   :  { %v243_v21 = vpop.f32.mrf.mxu0 }
 0x105   :  { %v165_v22 = vrot.slane %v155_v20, 4 }
 0x106   :  { %v145_v23 = vpop.f32.mrf.mxu0 }
 0x107   :  { %v166_v24 = vmax.f32 %v155_v20, %v165_v22 }
 0x108   :  { %v244_v25 = vpop.f32.mrf.mxu0 }
 0x109   :  { %v167_v26 = vrot.slane %v166_v24, 2 }
 0x10b   :  { %v168_v27 = vmax.f32 %v166_v24, %v167_v26 }
 0x10d   :  { %v169_v28 = vrot.slane %v168_v27, 1 }
 0x10f   :  { %v170_v29 = vmax.f32 %v168_v27, %v169_v28 }
 0x111   :  { %v171_v30 = vsub.f32 %v155_v20, %v170_v29  ;;  %v172_v31 = vsub.f32 -inf, %v170_v29 }
 0x113   :  { %v173_v32 = vmul.f32 1.442695, %v171_v30  ;;  %v175_v33 = vmul.f32 1.442695, %v172_v31 }
 0x115   :  { %259 = vpow2.f32 %v173_v32 }
 0x116   :  { %261 = vpow2.f32 %v175_v33 }
 0x122   :  { %v260_v34 = vpop.eup %259 }
 0x123   :  { %v262_v35 = vpop.eup %261 }
 0x124   :  { %v177_v36 = vadd.f32 %v262_v35, %v260_v34 }
 0x126   :  { %v178_v37 = vrot.slane %v177_v36, 4 }
 0x128   :  { %v179_v38 = vadd.f32 %v178_v37, %v177_v36 }
 0x12a   :  { %v180_v39 = vrot.slane %v179_v38, 2 }
 0x12c   :  { %v181_v40 = vadd.f32 %v180_v39, %v179_v38 }
 0x12e   :  { %v182_v41 = vrot.slane %v181_v40, 1 }
 0x130   :  { %v183_v42 = vadd.f32 %v182_v41, %v181_v40 }
 0x132   :  { %263 = vrcp.f32 %v183_v42 }
 0x13f   :  { %v264_v43 = vpop.eup %263 }
 0x140   :  { %v185_v44 = vmul.f32 %v264_v43, %v260_v34  ;;  %v186_v45 = vmul.f32 %v264_v43, %v262_v35 }
 0x142   :  { %187 = vst [vmem:[#allocation2] sm:$0xff] %v185_v44  ;;  %188 = vst [vmem:[#allocation2 + $0x8] sm:$0xff] %v186_v45 }
 0x143   :  { %276 = shalt.err (!%p273_p4)
}
 0x144   :  { %s290_s5 = smov 128   ;;  %s291_s6 = smov 8  }
 0x145   :  { %200 = dma.vmem_to_hbm [thread:$0]  %s195_s1, 256, %s357_s3, [#allocation3], %s290_s5, %s290_s5, %s291_s6  }
 0x146   :  { %285 = dma.done.wait [#allocation3], 256  }
 0x147   :  { %286 = vsyncadd [#allocation3], 4294967040 }
 0x148   :  { %204 = vsyncpa [#allocation3], 1 }

</bundles_post_ra>
